<compile_context>
chip_gen: v7x
topology: tpu7x:2x2x1
jax: 0.10.0
libtpu: 0.0.40
codegen_flags: <defaults>
</compile_context>

<pallas_src>
import jax
import jax.numpy as jnp
from jax import lax
from jax.experimental import pallas as pl
from jax.experimental.pallas import tpu as pltpu


def qnet_kernel(x_ref, w1_ref, b1_ref, w2_ref, b2_ref, o_ref):
    # x_ref : (TB, S)  native PyTorch layout (contiguous HBM tile)
    # w1_ref: (H, S)   fc1.weight (resident)      b1_ref: (1, H)
    # w2_ref: (A, H)   fc2.weight (resident)      b2_ref: (1, A)
    # o_ref : (TB, A)
    x = x_ref[...]

    # fc1:  x @ W1.T  via dot_general contracting S with S (no materialized
    # weight transpose); MXU matmul with f32 accumulation.  Hidden dim H sits
    # on the lane axis -> lane-dense intermediate.
    h = lax.dot_general(
        x, w1_ref[...],
        dimension_numbers=(((1,), (1,)), ((), ())),
        preferred_element_type=jnp.float32,
    )
    h = jnp.maximum(h + b1_ref[...], 0.0)

    # fc2:  relu(h) @ W2.T  (contract H with H).  Output block is (TB, A).
    o_ref[...] = lax.dot_general(
        h, w2_ref[...],
        dimension_numbers=(((1,), (1,)), ((), ())),
        preferred_element_type=jnp.float32,
    ) + b2_ref[...]


def qnet_forward(x, w1, b1, w2, b2, *, batch_tile=8192):
    """Qnet forward.

    x : (B, S) f32
    w1: (H, S) f32  (PyTorch fc1.weight layout)     b1: (H,) f32
    w2: (A, H) f32  (PyTorch fc2.weight layout)     b2: (A,) f32
    returns (B, A) f32  ==  relu(x @ w1.T + b1) @ w2.T + b2
    """
    B, S = x.shape
    H = w1.shape[0]
    A = w2.shape[0]
    assert batch_tile % 128 == 0, "batch_tile must be a multiple of 128"

    # 2-D biases so they broadcast against (TB, H) / (TB, A) in-kernel.
    b1r = b1.reshape(1, H)
    b2r = b2.reshape(1, A)

    flops = 2 * B * S * H + 2 * B * H * A
    bytes_accessed = 4 * (x.size + w1.size + b1.size + w2.size + b2.size + B * A)
    cost = pl.CostEstimate(flops=flops, transcendentals=0,
                           bytes_accessed=bytes_accessed)

    if B <= batch_tile:
        # Whole batch in one invocation: no grid, no pipeline machinery,
        # everything VMEM-resident (a few MiB at most on all generations).
        vmem = pl.BlockSpec(memory_space=pltpu.MemorySpace.VMEM)
        return pl.pallas_call(
            qnet_kernel,
            out_shape=jax.ShapeDtypeStruct((B, A), jnp.float32),
            in_specs=[vmem, vmem, vmem, vmem, vmem],
            out_specs=vmem,
            cost_estimate=cost,
        )(x, w1, b1r, w2, b2r)

    # Batch-tiled grid: stream x/out tiles, keep weights & biases resident.
    # Partial last tile is fine: batch rows are independent; padded tail rows
    # compute garbage that is masked on writeback.
    nb = pl.cdiv(B, batch_tile)
    return pl.pallas_call(
        qnet_kernel,
        out_shape=jax.ShapeDtypeStruct((B, A), jnp.float32),
        grid=(nb,),
        in_specs=[
            pl.BlockSpec((batch_tile, S), lambda i: (i, 0)),   # x tiles (streamed)
            pl.BlockSpec((H, S), lambda i: (0, 0)),            # W1 resident
            pl.BlockSpec((1, H), lambda i: (0, 0)),            # b1 resident
            pl.BlockSpec((A, H), lambda i: (0, 0)),            # W2 resident
            pl.BlockSpec((1, A), lambda i: (0, 0)),            # b2 resident
        ],
        out_specs=pl.BlockSpec((batch_tile, A), lambda i: (i, 0)),
        compiler_params=pltpu.CompilerParams(
            # "parallel" lets the runtime shard batch tiles across TCs on v7x;
            # if a profile shows it stays on one TC, switch this axis to
            # pltpu.CORE_PARALLEL (kept "parallel" here for portability).
            dimension_semantics=("parallel",),
        ),
        cost_estimate=cost,
    )(x, w1, b1r, w2, b2r)


def init_qnet_params(key, state_dim, hidden_dim, action_dim):
    """torch.nn.Linear-style init (uniform +/- 1/sqrt(fan_in)), PyTorch layouts:
    w1: (hidden_dim, state_dim), w2: (action_dim, hidden_dim)."""
    k1, k2, k3, k4 = jax.random.split(key, 4)
    bound1 = 1.0 / jnp.sqrt(jnp.float32(state_dim))
    bound2 = 1.0 / jnp.sqrt(jnp.float32(hidden_dim))
    w1 = jax.random.uniform(k1, (hidden_dim, state_dim), jnp.float32, -bound1, bound1)
    b1 = jax.random.uniform(k2, (hidden_dim,), jnp.float32, -bound1, bound1)
    w2 = jax.random.uniform(k3, (action_dim, hidden_dim), jnp.float32, -bound2, bound2)
    b2 = jax.random.uniform(k4, (action_dim,), jnp.float32, -bound2, bound2)
    return w1, b1, w2, b2


if __name__ == "__main__":
    # CartPole-style DQN shapes: state_dim=4, hidden_dim=128, action_dim=2.
    S, H, A = 4, 128, 2
    key = jax.random.PRNGKey(0)
    kx1, kx2, kp = jax.random.split(key, 3)
    w1, b1, w2, b2 = init_qnet_params(kp, S, H, A)

    def reference(xx):
        return jnp.maximum(xx @ w1.T + b1, 0.0) @ w2.T + b2

    # Case 1: small replay minibatch -> no-grid single-invocation path.
    B1 = 16
    x1 = jax.random.normal(kx1, (B1, S), jnp.float32)
    out1 = jax.block_until_ready(qnet_forward(x1, w1, b1, w2, b2))
    assert out1.shape == (B1, A)
    assert jnp.allclose(out1, reference(x1), atol=1e-4, rtol=1e-4)

    # Case 2: force the batch-tiled "parallel" grid path with a small tile
    # (weights resident, x/out streamed) and check it too.
    B2 = 512
    x2 = jax.random.normal(kx2, (B2, S), jnp.float32)
    out2 = jax.block_until_ready(qnet_forward(x2, w1, b1, w2, b2, batch_tile=128))
    assert out2.shape == (B2, A)
    assert jnp.allclose(out2, reference(x2), atol=1e-4, rtol=1e-4)

    print("KERNEL_OK")
</pallas_src>

<mosaic_0001>
module attributes {stable_mosaic.version = 11 : i64} {
  func.func @qnet_kernel(%arg0: memref<16x4xf32, #tpu.memory_space<vmem>>, %arg1: memref<128x4xf32, #tpu.memory_space<vmem>>, %arg2: memref<1x128xf32, #tpu.memory_space<vmem>>, %arg3: memref<2x128xf32, #tpu.memory_space<vmem>>, %arg4: memref<1x2xf32, #tpu.memory_space<vmem>>, %arg5: memref<16x2xf32, #tpu.memory_space<vmem>>) attributes {dimension_semantics = [], scalar_prefetch = 0 : i64, scratch_operands = 0 : i64, tpu.core_type = #tpu.core_type<tc>} {
    %c0 = arith.constant 0 : index
    %c0_0 = arith.constant 0 : index
    %0 = vector.load %arg0[%c0, %c0_0] : memref<16x4xf32, #tpu.memory_space<vmem>>, vector<16x4xf32>
    %c0_1 = arith.constant 0 : index
    %c0_2 = arith.constant 0 : index
    %1 = vector.load %arg1[%c0_1, %c0_2] : memref<128x4xf32, #tpu.memory_space<vmem>>, vector<128x4xf32>
    %cst = arith.constant dense<0.000000e+00> : vector<16x128xf32>
    %2 = tpu.matmul %0, %1, %cst {dimension_numbers = #tpu.dot_dimension_numbers<[1], [1], [0], [0], [0, 0, 1, 0], [], []>} : vector<16x4xf32>, vector<128x4xf32>, vector<16x128xf32> -> vector<16x128xf32>
    %c0_3 = arith.constant 0 : index
    %c0_4 = arith.constant 0 : index
    %3 = vector.load %arg2[%c0_3, %c0_4] : memref<1x128xf32, #tpu.memory_space<vmem>>, vector<1x128xf32>
    %4 = vector.broadcast %3 : vector<1x128xf32> to vector<16x128xf32>
    %5 = arith.addf %2, %4 : vector<16x128xf32>
    %cst_5 = arith.constant 0.000000e+00 : f32
    %6 = vector.broadcast %cst_5 : f32 to vector<16x128xf32>
    %7 = arith.maximumf %5, %6 : vector<16x128xf32>
    %c0_6 = arith.constant 0 : index
    %c0_7 = arith.constant 0 : index
    %8 = vector.load %arg3[%c0_6, %c0_7] : memref<2x128xf32, #tpu.memory_space<vmem>>, vector<2x128xf32>
    %cst_8 = arith.constant dense<0.000000e+00> : vector<16x2xf32>
    %9 = tpu.matmul %7, %8, %cst_8 {dimension_numbers = #tpu.dot_dimension_numbers<[1], [1], [0], [0], [0, 0, 1, 0], [], []>} : vector<16x128xf32>, vector<2x128xf32>, vector<16x2xf32> -> vector<16x2xf32>
    %c0_9 = arith.constant 0 : index
    %c0_10 = arith.constant 0 : index
    %10 = vector.load %arg4[%c0_9, %c0_10] : memref<1x2xf32, #tpu.memory_space<vmem>>, vector<1x2xf32>
    %11 = vector.broadcast %10 : vector<1x2xf32> to vector<16x2xf32>
    %12 = arith.addf %9, %11 : vector<16x2xf32>
    %c0_11 = arith.constant 0 : index
    %c0_12 = arith.constant 0 : index
    %13 = vector.load %arg5[%c0_11, %c0_12] : memref<16x2xf32, #tpu.memory_space<vmem>>, vector<16x2xf32>
    tpu.vector_store %arg5[%c0_11, %c0_12], %12 {strides = array<i32>} : memref<16x2xf32, #tpu.memory_space<vmem>>, vector<16x2xf32>,
    return
  }
}

</mosaic_0001>

<bundles_post_ra>
// kernel: tpu_custom_call.1
= control target key start
LH: loop header
LB: loop body
LE: loop exit
PB: predicated region body
PF: predicated region fallthrough
CT: control target
= control target key end

     0   :  { %vm45_vm0 = vcmask 31744   ;;  %vm260_vm2 = vcmask 15360   ;;  %s535_s1 = inlined_call_operand.vmem [shape: f32[128,4], index: 1, kind: input, shape index: {}]   ;;  %s536_s0 = inlined_call_operand.vmem [shape: f32[16,4], index: 0, kind: input, shape index: {}]   ;;  %s537_s3 = inlined_call_operand.vmem [shape: f32[2,128], index: 3, kind: input, shape index: {}]   ;;  %s538_s2 = inlined_call_operand.vmem [shape: f32[1,128], index: 2, kind: input, shape index: {}]   ;;  %s539_s4 = inlined_call_operand.vmem [shape: f32[1,2], index: 4, kind: input, shape index: {}]   ;;  %s540_s5 = inlined_call_operand.vmem [shape: f32[16,2], index: 5, kind: output, shape index: {}]  }
   0x1   :  { %v22_v0 = vld [vmem:[%s535_s1] sm:$0xff]  ;;  %v23_v1 = vld [vmem:[%s535_s1 + $0x8] sm:$0xff]  ;;  %vm434_vm1 = vmpackc.low %vm45_vm0, %vm45_vm0 }
   0x2   :  { %v348_v3 = vpack.c.bf16 %v23_v1, %v22_v0  ;;  %v24_v4 = vld [vmem:[%s535_s1 + $0x10] sm:$0xff]  ;;  %v25_v5 = vld [vmem:[%s535_s1 + $0x18] sm:$0xff]  ;;  %v20_v7 = vld [vmem:[%s536_s0] sm:$0xff] }
   0x3   :  { %v354_v6 = vpack.c.bf16 %v25_v5, %v24_v4  ;;  %v26_v8 = vld [vmem:[%s535_s1 + $0x20] sm:$0xff]  ;;  %v27_v9 = vld [vmem:[%s535_s1 + $0x28] sm:$0xff]  ;;  %340 = vmatprep.mubr.msk.f32.mxu0 %vm45_vm0, %v20_v7  ;;  %v28_v11 = vld [vmem:[%s535_s1 + $0x30] sm:$0xff] }
   0x4   :  { %350 = vmatprep.subr.msk.bf16.mxu0 %vm434_vm1, %v348_v3  ;;  %v360_v10 = vpack.c.bf16 %v27_v9, %v26_v8  ;;  %v29_v12 = vld [vmem:[%s535_s1 + $0x38] sm:$0xff]  ;;  %v30_v14 = vld [vmem:[%s535_s1 + $0x40] sm:$0xff]  ;;  %v31_v15 = vld [vmem:[%s535_s1 + $0x48] sm:$0xff] }
   0x5   :  { %353 = vmatpush3.bf16.xpose.msk.msra.mxu0 %vm434_vm1, %v348_v3  ;;  %v366_v13 = vpack.c.bf16 %v29_v12, %v28_v11  ;;  %v372_v16 = vpack.c.bf16 %v31_v15, %v30_v14  ;;  %v32_v17 = vld [vmem:[%s535_s1 + $0x50] sm:$0xff]  ;;  %v33_v18 = vld [vmem:[%s535_s1 + $0x58] sm:$0xff]  ;;  %v34_v20 = vld [vmem:[%s535_s1 + $0x60] sm:$0xff] }
   0x6   :  { %356 = vmatprep.subr.msk.bf16.mxu0 %vm434_vm1, %v354_v6  ;;  %v378_v19 = vpack.c.bf16 %v33_v18, %v32_v17  ;;  %v35_v21 = vld [vmem:[%s535_s1 + $0x68] sm:$0xff]  ;;  %v36_v23 = vld [vmem:[%s535_s1 + $0x70] sm:$0xff]  ;;  %v37_v24 = vld [vmem:[%s535_s1 + $0x78] sm:$0xff] }
   0x7   :  { %v384_v22 = vpack.c.bf16 %v35_v21, %v34_v20  ;;  %v390_v25 = vpack.c.bf16 %v37_v24, %v36_v23  ;;  %v21_v26 = vld [vmem:[%s536_s0 + $0x8] sm:$0xff]  ;;  %v177_v27 = vld [vmem:[%s537_s3] sm:$0x3] }
   0x8   :  { %343 = vmatprep.subr.mxu1 %v177_v27  ;;  %v267_v28 = vld [vmem:[%s538_s2] ss:$0 sm:$0xff] }
   0x9   :  { %344 = vmatpush3.xpose.msra.mxu1 %v177_v27  ;;  %v286_v35 = vld [vmem:[%s539_s4] ss:$0 sm:$0xff] }
   0xd   :  { %359 = vmatpush3.bf16.xpose.msk.msra.mxu0 %vm434_vm1, %v354_v6 }
   0xe   :  { %362 = vmatprep.subr.msk.bf16.mxu0 %vm434_vm1, %v360_v10 }
  0x15   :  { %365 = vmatpush3.bf16.xpose.msk.msra.mxu0 %vm434_vm1, %v360_v10 }
  0x16   :  { %368 = vmatprep.subr.msk.bf16.mxu0 %vm434_vm1, %v366_v13 }
  0x1d   :  { %371 = vmatpush3.bf16.xpose.msk.msra.mxu0 %vm434_vm1, %v366_v13 }
  0x1e   :  { %374 = vmatprep.subr.msk.bf16.mxu0 %vm434_vm1, %v372_v16 }
  0x25   :  { %377 = vmatpush3.bf16.xpose.msk.msra.mxu0 %vm434_vm1, %v372_v16 }
  0x26   :  { %380 = vmatprep.subr.msk.bf16.mxu0 %vm434_vm1, %v378_v19 }
  0x2d   :  { %383 = vmatpush3.bf16.xpose.msk.msra.mxu0 %vm434_vm1, %v378_v19 }
  0x2e   :  { %386 = vmatprep.subr.msk.bf16.mxu0 %vm434_vm1, %v384_v22 }
  0x35   :  { %389 = vmatpush3.bf16.xpose.msk.msra.mxu0 %vm434_vm1, %v384_v22 }
  0x36   :  { %392 = vmatprep.subr.msk.bf16.mxu0 %vm434_vm1, %v390_v25 }
  0x3d   :  { %395 = vmatpush3.bf16.xpose.msk.msra.mxu0 %vm434_vm1, %v390_v25 }
  0x44   :  { %341 = vmatmul.mubr.msk.f32.vlgmr.msra.gmra.mrb[0].mxu0 %vm45_vm0, %v21_v26 }
 0x117   :  { %v342_v29 = vpop.f32.mrb[0].mxu0 }
 0x118   :  { %v172_v30 = vadd.f32 %v342_v29, %v267_v28  ;;  %v166_v31 = vpop.f32.mrb[1].mxu0 }
 0x119   :  { %v167_v32 = vadd.f32 %v267_v28, %v166_v31 }
 0x11a   :  { %v176_v34 = vmax.f32 %v172_v30, 0.0 }
 0x11b   :  { %v175_v33 = vmax.f32 %v167_v32, 0.0 }
 0x11d   :  { %345 = vmatprep.mubr.f32.mxu1 %v175_v33 }
 0x11e   :  { %346 = vmatmul.mubr.f32.vlgmr.msra.gmra.mrb[0].mxu1 %v176_v34 }
 0x1f1   :  { %v347_v36 = vpop.f32.mrb[0].mxu1 }
 0x1f2   :  { %v257_v37 = vadd.f32 %v347_v36, %v286_v35  ;;  %v251_v38 = vpop.f32.mrb[1].mxu1 }
 0x1f3   :  { %v252_v39 = vadd.f32 %v286_v35, %v251_v38 }
 0x1f4   :  { %262 = vst.msk [vmem:[%s540_s5 + $0x8] sm:$0xff] %vm260_vm2, %v257_v37 }
 0x1f5   :  { %261 = vst.msk [vmem:[%s540_s5] sm:$0xff] %vm260_vm2, %v252_v39 }

</bundles_post_ra>
